<compile_context>
chip_gen: v7x
topology: tpu7x:2x2x1
jax: 0.10.0
libtpu: 0.0.40
codegen_flags: <defaults>
</compile_context>

<pallas_src>
import jax
import jax.numpy as jnp
from jax.experimental import pallas as pl
from jax.experimental.pallas import tpu as pltpu

PATCH = 8
NUM_CLASSES = 19


# --------------------------- Pallas kernels ---------------------------

def _backbone_kernel(p_ref, wf_ref, bf_ref, o_ref):
    # p : (K, TL) bf16 transposed patches      wf: (1, K) bf16 folded weights
    # bf: (1,) f32 folded bias in SMEM         o : (1, TL) bf16 low-res folded logits
    acc = jnp.dot(wf_ref[...], p_ref[...], preferred_element_type=jnp.float32)
    o_ref[...] = (acc + bf_ref[0]).astype(o_ref.dtype)


def _head_kernel(x1_ref, a_ref, bt_ref, o_ref):
    # x1: (1, h, w) bf16 low-res map for batch n
    # a : (TH, h) bf16 row-interp tile         bt: (w, W) bf16 column-interp matrix
    # o : (1, 1, TH, W) f32 sigmoid output tile
    #
    # x1 @ Bt is recomputed for every H tile of the same batch (cheap: h*w*W MACs per
    # tile on the bf16 MXU) so there is no cross-iteration carry and both grid axes can
    # be 'parallel'.
    t = jnp.dot(x1_ref[0], bt_ref[...], preferred_element_type=jnp.float32)       # (h, W)
    z = jnp.dot(a_ref[...], t.astype(jnp.bfloat16),
                preferred_element_type=jnp.float32)                               # (TH, W)
    o_ref[0, 0] = pl.reciprocal(1.0 + jnp.exp(-z), approx=True)


# --------------------------- Wrappers (glue) ---------------------------

def _pick_tile(total, target, multiple):
    """Largest divisor of `total` that is <= target and a multiple of `multiple`.
    Falls back to `total` (a single tile) if none exists — at that point the block
    equals the full array dim, which is always legal, but may cost extra VMEM."""
    if total <= target:
        return total
    t = (target // multiple) * multiple
    while t >= multiple:
        if total % t == 0:
            return t
        t -= multiple
    return total


def _bilinear_matrix(out_size, in_size):
    """Row-interpolation matrix matching F.interpolate(mode='bilinear',
    align_corners=False)."""
    scale = in_size / out_size
    i = jnp.arange(out_size, dtype=jnp.float32)
    src = jnp.maximum((i + 0.5) * scale - 0.5, 0.0)
    i0 = jnp.clip(jnp.floor(src).astype(jnp.int32), 0, in_size - 1)
    i1 = jnp.minimum(i0 + 1, in_size - 1)
    frac = src - i0.astype(jnp.float32)
    m = jnp.zeros((out_size, in_size), jnp.float32)
    m = m.at[jnp.arange(out_size), i0].add(1.0 - frac)
    m = m.at[jnp.arange(out_size), i1].add(frac)
    return m


def patch_embed_folded(x, wf, bf, *, tl_target=8192):
    """Stand-in EViT backbone with the 1x1 head conv folded in:
    Conv2d(C_in, 1, kernel=8, stride=8) as a lane-tiled bf16 MXU matvec.
    Returns the low-resolution folded logit map x1 of shape (N, h, w), bf16."""
    N, C, H, W = x.shape
    h, w = H // PATCH, W // PATCH
    K = C * PATCH * PATCH
    M = N * h * w

    # bf16 before the XLA transpose so the patch-extraction round trip is half-width.
    xb = x.astype(jnp.bfloat16)
    xp = xb.reshape(N, C, h, PATCH, w, PATCH)
    xp = jnp.transpose(xp, (1, 3, 5, 0, 2, 4))          # (C, p, p, N, h, w)
    patches_t = xp.reshape(K, M)                        # contraction dim on sublanes

    tl = _pick_tile(M, tl_target, 128)                  # lane-dense output tiles
    out = pl.pallas_call(
        _backbone_kernel,
        out_shape=jax.ShapeDtypeStruct((1, M), jnp.bfloat16),
        grid_spec=pltpu.PrefetchScalarGridSpec(
            num_scalar_prefetch=0,
            grid=(M // tl,),
            in_specs=[
                pl.BlockSpec((K, tl), lambda i: (0, i)),
                pl.BlockSpec((1, K), lambda i: (0, 0)),
                pl.BlockSpec(memory_space=pltpu.MemorySpace.SMEM),
            ],
            out_specs=pl.BlockSpec((1, tl), lambda i: (0, i)),
        ),
        compiler_params=pltpu.CompilerParams(dimension_semantics=("parallel",)),
    )(patches_t, wf, bf)
    return out.reshape(N, h, w)


def head_upsample_sigmoid(x1, out_hw, *, th_target=256):
    """Head: bilinear interpolate the (already channel-collapsed) low-res map to (H, W)
    and apply sigmoid.  Both grid axes are independent ('parallel')."""
    N, h, w = x1.shape
    H, W = out_hw
    # Bilinear weights of an integer-factor, align_corners=False upsample are multiples
    # of 1/(2*scale) and hence exact in bf16.
    A = _bilinear_matrix(H, h).astype(jnp.bfloat16)     # (H, h)
    Bt = _bilinear_matrix(W, w).T.astype(jnp.bfloat16)  # (w, W)
    x1b = x1.astype(jnp.bfloat16)

    th = _pick_tile(H, th_target, 8)
    return pl.pallas_call(
        _head_kernel,
        out_shape=jax.ShapeDtypeStruct((N, 1, H, W), jnp.float32),
        grid_spec=pltpu.PrefetchScalarGridSpec(
            num_scalar_prefetch=0,
            grid=(N, H // th),
            in_specs=[
                pl.BlockSpec((1, h, w), lambda n, t: (n, 0, 0)),
                pl.BlockSpec((th, h), lambda n, t: (t, 0)),
                pl.BlockSpec((w, W), lambda n, t: (0, 0)),
            ],
            out_specs=pl.BlockSpec((1, 1, th, W), lambda n, t: (n, 0, t, 0)),
        ),
        compiler_params=pltpu.CompilerParams(
            dimension_semantics=("parallel", "parallel")),
    )(x1b, A, Bt)


def seg_evit_forward(x, params):
    H, W = x.shape[-2:]
    C = x.shape[1]
    K = C * PATCH * PATCH

    # Fold Conv2d(19,1,1) into the patch-embed weights (exact: everything is linear and
    # bilinear rows/cols sum to 1, so the constant bias commutes with the upsample).
    cw = params["conv_w"].reshape(NUM_CLASSES)
    cb = params["conv_b"].reshape(())
    wf = jnp.einsum("o,ok->k", cw, params["pe_w"].reshape(NUM_CLASSES, K))
    wf = wf.reshape(1, K).astype(jnp.bfloat16)
    bf = (jnp.dot(cw, params["pe_b"]) + cb).reshape(1).astype(jnp.float32)

    x1 = patch_embed_folded(x, wf, bf)                  # (N, h, w) low-res folded logits
    return head_upsample_sigmoid(x1, (H, W))            # (N, 1, H, W) sigmoid map


# --------------------------- Parameters & reference ---------------------------

def init_params(key, c_in=3):
    k1, k2, k3, k4 = jax.random.split(key, 4)
    fan_cv = NUM_CLASSES
    return {
        # stand-in backbone (Conv2d(c_in, 19, 8, stride=8))
        "pe_w": 0.05 * jax.random.normal(k1, (NUM_CLASSES, c_in, PATCH, PATCH), jnp.float32),
        "pe_b": 0.01 * jax.random.normal(k2, (NUM_CLASSES,), jnp.float32),
        # nn.Conv2d(19, 1, 1): weight (1,19,1,1) flattened, bias (1,)
        "conv_w": jax.random.uniform(k3, (NUM_CLASSES,), jnp.float32,
                                     -1.0 / fan_cv ** 0.5, 1.0 / fan_cv ** 0.5),
        "conv_b": jax.random.uniform(k4, (1,), jnp.float32,
                                     -1.0 / fan_cv ** 0.5, 1.0 / fan_cv ** 0.5),
    }


def reference_forward(x, params):
    """Pure-JAX f32 reference following the ORIGINAL module ordering
    (backbone -> interpolate -> 1x1 conv -> sigmoid) for a correctness check."""
    N, C, H, W = x.shape
    h, w = H // PATCH, W // PATCH
    xp = x.reshape(N, C, h, PATCH, w, PATCH)
    xp = jnp.transpose(xp, (0, 2, 4, 1, 3, 5)).reshape(N * h * w, -1)
    w_mat = params["pe_w"].reshape(NUM_CLASSES, -1).T
    y = xp @ w_mat + params["pe_b"]
    y = jnp.transpose(y.reshape(N, h, w, NUM_CLASSES), (0, 3, 1, 2))
    A = _bilinear_matrix(H, h)
    B = _bilinear_matrix(W, w)
    yi = jnp.einsum("Hh,nchw,Ww->ncHW", A, y, B)
    out = jnp.einsum("ncHW,c->nHW", yi, params["conv_w"]) + params["conv_b"][0]
    return jax.nn.sigmoid(out)[:, None, :, :]


# --------------------------- Main ---------------------------

if __name__ == "__main__":
    key = jax.random.PRNGKey(0)
    kx, kp = jax.random.split(key)

    N, C_IN, H, W = 2, 3, 32, 32
    x = jax.random.normal(kx, (N, C_IN, H, W), jnp.float32)
    params = init_params(kp, c_in=C_IN)

    out = jax.jit(seg_evit_forward)(x, params)
    out = jax.block_until_ready(out)

    ref = reference_forward(x, params)
    assert out.shape == (N, 1, H, W), out.shape
    # bf16 MXU paths + approx reciprocal perturb numerics by ~1e-3 at these magnitudes.
    max_err = float(jnp.max(jnp.abs(out - ref)))
    assert jnp.allclose(out, ref, atol=1e-2, rtol=1e-2), max_err

    print("KERNEL_OK")
</pallas_src>

<mosaic_0001>
module attributes {stable_mosaic.version = 11 : i64} {
  func.func private @main(%arg0: i32) attributes {dimension_semantics = [#tpu.dimension_semantics<core_parallel>], iteration_bounds = array<i64: 2>, tpu.core_type = #tpu.core_type<sc_scalar_subcore>, window_params = []} {
    return
  }
}

module attributes {stable_mosaic.version = 11 : i64} {
  func.func private @main(%arg0: i32) attributes {dimension_semantics = [#tpu.dimension_semantics<core_parallel>], iteration_bounds = array<i64: 2>, tpu.core_type = #tpu.core_type<sc_scalar_subcore>, window_params = []} {
    return
  }
}

module attributes {stable_mosaic.version = 11 : i64} {
  func.func @_backbone_kernel(%arg0: i32, %arg1: memref<192x32xbf16, #tpu.memory_space<vmem>>, %arg2: memref<1x192xbf16, #tpu.memory_space<vmem>>, %arg3: memref<1xf32, #tpu.memory_space<smem>>, %arg4: memref<1x32xbf16, #tpu.memory_space<vmem>>) attributes {dimension_semantics = [#tpu.dimension_semantics<parallel>], iteration_bounds = array<i64: 1>, scalar_prefetch = 0 : i64, scratch_operands = 0 : i64, tpu.core_type = #tpu.core_type<tc>, window_params = [{transform_indices = @transform_0, window_bounds = array<i64: 192, 32>}, {pipeline_mode = #tpu.pipeline_mode<synchronous>, transform_indices = @transform_1, window_bounds = array<i64: 1, 192>}, {transform_indices = @transform_2, window_bounds = array<i64: 1>}, {transform_indices = @transform_3, window_bounds = array<i64: 1, 32>}]} {
    %c0 = arith.constant 0 : index
    %c0_0 = arith.constant 0 : index
    %0 = vector.load %arg2[%c0, %c0_0] : memref<1x192xbf16, #tpu.memory_space<vmem>>, vector<1x192xbf16>
    %c0_1 = arith.constant 0 : index
    %c0_2 = arith.constant 0 : index
    %1 = vector.load %arg1[%c0_1, %c0_2] : memref<192x32xbf16, #tpu.memory_space<vmem>>, vector<192x32xbf16>
    %cst = arith.constant dense<0.000000e+00> : vector<1x32xf32>
    %2 = tpu.matmul %0, %1, %cst {dimension_numbers = #tpu.dot_dimension_numbers<[1], [0], [0], [1], [0, 0, 1, 1], [], []>} : vector<1x192xbf16>, vector<192x32xbf16>, vector<1x32xf32> -> vector<1x32xf32>
    %c0_3 = arith.constant 0 : index
    %3 = memref.load %arg3[%c0_3] : memref<1xf32, #tpu.memory_space<smem>>
    %4 = vector.broadcast %3 : f32 to vector<1x32xf32>
    %5 = arith.addf %2, %4 : vector<1x32xf32>
    %6 = arith.truncf %5 : vector<1x32xf32> to vector<1x32xbf16>
    %c0_4 = arith.constant 0 : index
    %c0_5 = arith.constant 0 : index
    %7 = vector.load %arg4[%c0_4, %c0_5] : memref<1x32xbf16, #tpu.memory_space<vmem>>, vector<1x32xbf16>
    tpu.vector_store %arg4[%c0_4, %c0_5], %6 {strides = array<i32>} : memref<1x32xbf16, #tpu.memory_space<vmem>>, vector<1x32xbf16>,
    return
  }
  func.func @transform_0(%arg0: i32) -> (i32, i32) {
    %c0_i32 = arith.constant 0 : i32
    %c0_i32_0 = arith.constant 0 : i32
    return %c0_i32, %arg0 : i32, i32
  }
  func.func @transform_1(%arg0: i32) -> (i32, i32) {
    %c0_i32 = arith.constant 0 : i32
    %c0_i32_0 = arith.constant 0 : i32
    %c0_i32_1 = arith.constant 0 : i32
    return %c0_i32, %c0_i32_0 : i32, i32
  }
  func.func @transform_2(%arg0: i32) -> i32 {
    %c0_i32 = arith.constant 0 : i32
    %c0_i32_0 = arith.constant 0 : i32
    return %c0_i32 : i32
  }
  func.func @transform_3(%arg0: i32) -> (i32, i32) {
    %c0_i32 = arith.constant 0 : i32
    %c0_i32_0 = arith.constant 0 : i32
    return %c0_i32, %arg0 : i32, i32
  }
}

module attributes {stable_mosaic.version = 11 : i64} {
  func.func @_head_kernel(%arg0: i32, %arg1: i32, %arg2: memref<1x4x4xbf16, #tpu.memory_space<vmem>>, %arg3: memref<32x4xbf16, #tpu.memory_space<vmem>>, %arg4: memref<4x32xbf16, #tpu.memory_space<vmem>>, %arg5: memref<1x1x32x32xf32, #tpu.memory_space<vmem>>) attributes {dimension_semantics = [#tpu.dimension_semantics<parallel>, #tpu.dimension_semantics<parallel>], iteration_bounds = array<i64: 2, 1>, scalar_prefetch = 0 : i64, scratch_operands = 0 : i64, tpu.core_type = #tpu.core_type<tc>, window_params = [{transform_indices = @transform_0, window_bounds = array<i64: 1, 4, 4>}, {transform_indices = @transform_1, window_bounds = array<i64: 32, 4>}, {pipeline_mode = #tpu.pipeline_mode<synchronous>, transform_indices = @transform_2, window_bounds = array<i64: 4, 32>}, {transform_indices = @transform_3, window_bounds = array<i64: 1, 1, 32, 32>}]} {
    %c0 = arith.constant 0 : index
    %c0_0 = arith.constant 0 : index
    %c0_1 = arith.constant 0 : index
    %0 = vector.load %arg2[%c0, %c0_0, %c0_1] : memref<1x4x4xbf16, #tpu.memory_space<vmem>>, vector<1x4x4xbf16>
    %1 = vector.shape_cast %0 : vector<1x4x4xbf16> to vector<4x4xbf16>
    %c0_2 = arith.constant 0 : index
    %c0_3 = arith.constant 0 : index
    %2 = vector.load %arg4[%c0_2, %c0_3] : memref<4x32xbf16, #tpu.memory_space<vmem>>, vector<4x32xbf16>
    %cst = arith.constant dense<0.000000e+00> : vector<4x32xf32>
    %3 = tpu.matmul %1, %2, %cst {dimension_numbers = #tpu.dot_dimension_numbers<[1], [0], [0], [1], [0, 0, 1, 1], [], []>} : vector<4x4xbf16>, vector<4x32xbf16>, vector<4x32xf32> -> vector<4x32xf32>
    %c0_4 = arith.constant 0 : index
    %c0_5 = arith.constant 0 : index
    %4 = vector.load %arg3[%c0_4, %c0_5] : memref<32x4xbf16, #tpu.memory_space<vmem>>, vector<32x4xbf16>
    %5 = arith.truncf %3 : vector<4x32xf32> to vector<4x32xbf16>
    %cst_6 = arith.constant dense<0.000000e+00> : vector<32x32xf32>
    %6 = tpu.matmul %4, %5, %cst_6 {dimension_numbers = #tpu.dot_dimension_numbers<[1], [0], [0], [1], [0, 0, 1, 1], [], []>} : vector<32x4xbf16>, vector<4x32xbf16>, vector<32x32xf32> -> vector<32x32xf32>
    %cst_7 = arith.constant 0.000000e+00 : f32
    %7 = vector.broadcast %cst_7 : f32 to vector<32x32xf32>
    %8 = arith.subf %7, %6 : vector<32x32xf32>
    %9 = math.exp %8 : vector<32x32xf32>
    %cst_8 = arith.constant 1.000000e+00 : f32
    %10 = vector.broadcast %cst_8 : f32 to vector<32x32xf32>
    %11 = arith.addf %10, %9 : vector<32x32xf32>
    %12 = tpu.reciprocal %11 {approx = true} : vector<32x32xf32> -> vector<32x32xf32>
    %c0_9 = arith.constant 0 : index
    %c0_10 = arith.constant 0 : index
    %c0_11 = arith.constant 0 : index
    %c0_12 = arith.constant 0 : index
    %13 = vector.load %arg5[%c0_9, %c0_10, %c0_11, %c0_12] : memref<1x1x32x32xf32, #tpu.memory_space<vmem>>, vector<1x1x32x32xf32>
    %14 = vector.shape_cast %13 : vector<1x1x32x32xf32> to vector<32x32xf32>
    %15 = vector.shape_cast %12 : vector<32x32xf32> to vector<1x1x32x32xf32>
    tpu.vector_store %arg5[%c0_9, %c0_10, %c0_11, %c0_12], %15 {strides = array<i32>} : memref<1x1x32x32xf32, #tpu.memory_space<vmem>>, vector<1x1x32x32xf32>,
    return
  }
  func.func @transform_0(%arg0: i32, %arg1: i32) -> (i32, i32, i32) {
    %c0_i32 = arith.constant 0 : i32
    %c0_i32_0 = arith.constant 0 : i32
    %c0_i32_1 = arith.constant 0 : i32
    return %arg0, %c0_i32, %c0_i32_0 : i32, i32, i32
  }
  func.func @transform_1(%arg0: i32, %arg1: i32) -> (i32, i32) {
    %c0_i32 = arith.constant 0 : i32
    %c0_i32_0 = arith.constant 0 : i32
    return %arg1, %c0_i32 : i32, i32
  }
  func.func @transform_2(%arg0: i32, %arg1: i32) -> (i32, i32) {
    %c0_i32 = arith.constant 0 : i32
    %c0_i32_0 = arith.constant 0 : i32
    %c0_i32_1 = arith.constant 0 : i32
    return %c0_i32, %c0_i32_0 : i32, i32
  }
  func.func @transform_3(%arg0: i32, %arg1: i32) -> (i32, i32, i32, i32) {
    %c0_i32 = arith.constant 0 : i32
    %c0_i32_0 = arith.constant 0 : i32
    %c0_i32_1 = arith.constant 0 : i32
    return %arg0, %c0_i32, %arg1, %c0_i32_0 : i32, i32, i32, i32
  }
}

</mosaic_0001>

<bundles_post_ra>
// kernel: seg_evit_forward.2
= control target key start
LH: loop header
LB: loop body
LE: loop exit
PB: predicated region body
PF: predicated region fallthrough
CT: control target
= control target key end

     0   :  { %v222_v0 = vmov 0   ;;  %v223_v3 = vmov 1966171168   ;;  %v55_v5 = vlaneseq  ;;  %vm139_vm0 = vcmask 523264   ;;  %s292_s0 = inlined_call_operand.vmem [shape: bf16[192,32], index: 0, kind: input, shape index: {}]   ;;  %s293_s1 = inlined_call_operand.vmem [shape: bf16[1,192], index: 1, kind: input, shape index: {}]   ;;  %s294_s2 = inlined_call_operand.<no memory space> [shape: f32[1], index: 2, kind: input, shape index: {}]   ;;  %s295_s3 = inlined_call_operand.vmem [shape: bf16[1,32], index: 3, kind: output, shape index: {}]  }
   0x1   :  { %143 = vmatprep.subr.bf16.mxu0 %v222_v0  ;;  %v210_v1 = vld [vmem:[%s292_s0] sm:$0xff]   ;;  %v211_v2 = vld [vmem:[%s292_s0 + $0x8] sm:$0xff]   ;;  %v53_v4 = vunpack.c.l.s4 %v223_v3  ;;  %v212_v6 = vld [vmem:[%s292_s0 + $0x10] sm:$0xff]   ;;  %v42_v23 = vstv %s294_s2  ;;  %vm184_vm1 = vcmask 253952   ;;  %vm185_vm2 = vsmask.f32 256 }
   0x2   :  { %144 = vmatpush1.bf16.msra.mxu0 %v210_v1  ;;  %v56_v8 = vshrl.u32 %v55_v5, 7  ;;  %v213_v9 = vld [vmem:[%s292_s0 + $0x18] sm:$0xff]   ;;  %v194_v11 = vld.sshfl [vmem:[%s293_s1] sm:$0x11 pattern:$0x75316420]  ;;  %vm186_vm3 = vmand %vm184_vm1, %vm185_vm2 }
   0x3   :  { %145 = vmatprep.subr.bf16.mxu0 %v222_v0  ;;  %v54_v7 = vunpack.c.0.s8 %v53_v4  ;;  %v51_v12 = vcombine.high %v194_v11, %v194_v11  ;;  %v214_v13 = vld [vmem:[%s292_s0 + $0x20] sm:$0xff]   ;;  %v215_v15 = vld [vmem:[%s292_s0 + $0x28] sm:$0xff]   ;;  %v216_v16 = vld [vmem:[%s292_s0 + $0x30] sm:$0xff]  }
   0x4   :  { %v217_v17 = vld [vmem:[%s292_s0 + $0x38] sm:$0xff]   ;;  %v218_v18 = vld [vmem:[%s292_s0 + $0x40] sm:$0xff]   ;;  %v219_v19 = vld [vmem:[%s292_s0 + $0x48] sm:$0xff]  }
   0x5   :  { %v57_v10 = vsub.s32 %v54_v7, %v56_v8  ;;  %v220_v20 = vld [vmem:[%s292_s0 + $0x50] sm:$0xff]   ;;  %v221_v21 = vld [vmem:[%s292_s0 + $0x58] sm:$0xff]   ;;  %v187_v27 = vld [vmem:[%s295_s3] sm:$0x1] }
   0x6   :  { %146 = vmatpush1.bf16.msra.mxu0 %v211_v2 }
   0x7   :  { %147 = vmatprep.subr.bf16.mxu0 %v222_v0  ;;  %v65_v14 = vrot.slane %v51_v12, %v57_v10  ;;  %v58_v22 = vrot.slane %v194_v11, %v57_v10 }
   0x9   :  { %207 = vmatprep.mubr.msk.bf16.mxu0 %vm139_vm0, %v65_v14 }
   0xa   :  { %148 = vmatpush1.bf16.msra.mxu0 %v212_v6 }
   0xb   :  { %149 = vmatprep.subr.bf16.mxu0 %v222_v0 }
   0xe   :  { %150 = vmatpush1.bf16.msra.mxu0 %v213_v9 }
   0xf   :  { %151 = vmatprep.subr.bf16.mxu0 %v222_v0 }
  0x12   :  { %152 = vmatpush1.bf16.msra.mxu0 %v214_v13 }
  0x13   :  { %153 = vmatprep.subr.bf16.mxu0 %v222_v0 }
  0x16   :  { %154 = vmatpush1.bf16.msra.mxu0 %v215_v15 }
  0x17   :  { %155 = vmatprep.subr.bf16.mxu0 %v222_v0 }
  0x1a   :  { %156 = vmatpush1.bf16.msra.mxu0 %v216_v16 }
  0x1b   :  { %157 = vmatprep.subr.bf16.mxu0 %v222_v0 }
  0x1e   :  { %158 = vmatpush1.bf16.msra.mxu0 %v217_v17 }
  0x1f   :  { %159 = vmatprep.subr.bf16.mxu0 %v222_v0 }
  0x22   :  { %160 = vmatpush1.bf16.msra.mxu0 %v218_v18 }
  0x23   :  { %161 = vmatprep.subr.bf16.mxu0 %v222_v0 }
  0x26   :  { %162 = vmatpush1.bf16.msra.mxu0 %v219_v19 }
  0x27   :  { %163 = vmatprep.subr.bf16.mxu0 %v222_v0 }
  0x2a   :  { %164 = vmatpush1.bf16.msra.mxu0 %v220_v20 }
  0x2b   :  { %165 = vmatprep.subr.bf16.mxu0 %v222_v0 }
  0x2e   :  { %166 = vmatpush1.bf16.msra.mxu0 %v221_v21 }
  0x31   :  { %176 = vmatmul.mubr.bf16.vlgmr.msra.gmra.mrb[0].mxu0 %v58_v22 }
 0x104   :  { %v177_v24 = vpop.f32.mrb[0].mxu0 }
 0x105   :  { %v178_v25 = vadd.f32 %v177_v24, %v42_v23  ;;  %v179_v26 = vpop.f32.mrb[1].mxu0 }
 0x106   :  { %v180_v28 = vpop.f32.mrb[2].mxu0 }
 0x107   :  { %v183_v29 = vpack.c.bf16 %v178_v25, %v178_v25  ;;  %v181_v30 = vpop.f32.mrb[3].mxu0 }
 0x109   :  { %v188_v31 = vsel %vm186_vm3, %v183_v29, %v187_v27 }
 0x10a   :  { %189 = vst [vmem:[%s295_s3] sm:$0x1] %v188_v31 }

// kernel: seg_evit_forward.3
= control target key start
LH: loop header
LB: loop body
LE: loop exit
PB: predicated region body
PF: predicated region fallthrough
CT: control target
= control target key end

     0   :  { %8 = vsyncpa [#allocation3], 0  ;;  %s802_s0 = inlined_call_operand.vmem [shape: bf16[2,4,4], index: 0, kind: input, shape index: {}]   ;;  %s803_s1 = inlined_call_operand.vmem [shape: bf16[32,4], index: 1, kind: input, shape index: {}]   ;;  %s804_s2 = inlined_call_operand.vmem [shape: bf16[4,32], index: 2, kind: input, shape index: {}]   ;;  %s805_s3 = inlined_call_operand.hbm [shape: f32[2,1,32,32], index: 3, kind: output, shape index: {}]  }
   0x1   :  { %10 = vsyncpa [#allocation3 + $0x1], 0  ;;  %s675_s12 = smov 0   ;;  %s677_s13 = smov 0  }
   0x2   :  { %s679_s14 = smov 0   ;;  %s681_s15 = smov 0  }
   0x3   :  { %s683_s16 = smov 0   ;;  %s685_s17 = smov 0  }
   0x4 LB: > { %s456_s18 = sadd.s32 4294967295, %s648_s17   ;;  %s457_s19 = sadd.s32 4294967294, %s648_s17   ;;  %s648_s17 = sphi %s685_s17, %s16_s17   ;;  %s644_s16 = sphi %s683_s16, %s812_s16   ;;  %s640_s15 = sphi %s681_s15, %s811_s15   ;;  %s636_s14 = sphi %s679_s14, %s810_s14   ;;  %s632_s13 = sphi %s677_s13, %s809_s13   ;;  %s628_s12 = sphi %s675_s12, %s808_s12  }
   0x5   : > { %s28_s20 = sadd.s32 1, %s644_s16  ;;  %s110_s21 = sadd.s32 1, %s636_s14 }
   0x6   : > { %p30_p0 = scmp.ge.s32.totalorder %s28_s20, 2  ;;  %p120_p1 = scmp.ne.s32.totalorder %s636_s14, %s632_s13 }
   0x7   : > { %p121_p2 = scmp.eq.s32.totalorder %s456_s18, 1  ;;  %p126_p3 = scmp.ne.s32.totalorder %s632_s13, %s628_s12 }
   0x8   : > { %s814_s20 = smov (%p30_p0, %s28_s20), 0  ;;  %p127_p5 = scmp.eq.s32.totalorder %s457_s19, 1 }
   0x9   : > { %p715_p4 = por %p121_p2, %p120_p1  ;;  %s105_s23 = ssub.s32 %s644_s16, %s814_s20 }
   0xa   : > { %p461_p6 = scmp.ge.s32.totalorder %s648_s17, 1  ;;  %p108_p7 = scmp.eq.s32.totalorder %s105_s23, 0 }
   0xb   : > { %p722_p8 = por %p127_p5, %p126_p3  ;;  %p164_p9 = scmp.lt.s32.totalorder %s648_s17, 3 }
   0xc   : > { %s728_s25 = scalar_select %p108_p7, %s636_s14, %s110_s21  }
   0xd   : > { %p165_p10 = pnand %p461_p6, %p164_p9 }
   0xe   : > { %v205_v0 = vld [vmem:[%s804_s2] sm:$0x3] (!%p165_p10)  ;;  %vm210_vm0 = vcmask (!%p165_p10), 1041408   ;;  %p192_p11 = scmp.lt.s32.totalorder (!%p165_p10), %s640_s15, 1  ;;  %v650_v1 = vmov (!%p165_p10), 0.0   ;;  %vm651_vm1 = vmmov (!%p165_p10), 0  }
   0xf   : > { %168 = sbr.rel (%p165_p10) target bundleno = 503 (0x1f7), region = 32  ;;  %480 = vmatprep.subr.bf16.mxu0 (!%p165_p10), %v650_v1  ;;  %v212_v2 = vsel (!%p165_p10), %vm210_vm0, %v205_v0, 0  ;;  %482 = vmatprep.mubr.msk.bf16.mxu0 (!%p165_p10), %vm651_vm1, %v650_v1  ;;  %vm206_vm2 = vcmask (!%p165_p10), 31744   ;;  %v552_v4 = vld [vmem:[%s803_s1] sm:$0xff] (!%p165_p10)   ;;  %v553_v11 = vld [vmem:[%s803_s1 + $0x8] sm:$0xff] (!%p165_p10)   ;;  %s189_s10 = sand.u32 (!%p165_p10), 1, %s632_s13  }
  0x10   : > { %481 = vmatpush3.bf16.msra.mxu0 (!%p165_p10), %v212_v2  ;;  %488 = vmatprep.mubr.msk.bf16.mxu1 (!%p165_p10), %vm206_vm2, %v552_v4  ;;  %s462_s11 = sshll.u32 (!%p165_p10), %s189_s10, 5  ;;  %vm347_vm3 = vcmask (!%p165_p10), 261120   ;;  %s474_s18 = sshll.u32 (!%p165_p10), %s640_s15, 9 }
  0x11   : > { %s191_s19 = scalar_lea.vmem (!%p165_p10), [#allocation2], %s462_s11  ;;  %s752_s27 = scalar_lea.hbm (!%p165_p10), %s805_s3, %s474_s18 }
  0x12   : > { %s368_s21 = sshll.u32 (!%p165_p10), %s191_s19, 4  ;;  %s754_s21 = int_to_ptr.vmem [resolvable:$true] %s368_s21 }
  0x16   : > { %s193_s28 = scalar_select %p192_p11, %s640_s15, 1 }
  0x17   : > { %s756_s15 = scalar_lea.sflag [#allocation3], %s189_s10 }
  0x18   : > { %s463_s29 = sshll.u32 %s193_s28, 1  ;;  %s570_s28 = scalar_lea.vmem %s754_s21, 512 }
  0x19   : > { %s195_s5 = scalar_lea.vmem %s802_s0, %s463_s29  ;;  %p571_p12 = scmp.ne.s32.totalorder %s754_s21, %s570_s28 }
  0x1a   : > { %v204_v3 = vld [vmem:[%s195_s5] sm:$0x3]  ;;  %s652_s29 = smov [#allocation2]  }
  0x1b   : > { %483 = vmatmul.mubr.msk.bf16.vlgmr.msra.gmra.mrb[0].mxu0 %vm206_vm2, %v204_v3  ;;  %p572_p13 = pnand %p571_p12, %p715_p4  ;;  %s574_s30 = sshll.u32 %s652_s29, 4  ;;  %s575_s30 = int_to_ptr.vmem [resolvable:$false] %s574_s30 }
  0x1c   : > { %s576_s4 = scalar_lea.vmem %s575_s30, 1024  ;;  %p577_p1 = scmp.lt.s32.totalorder %s754_s21, %s575_s30 }
  0x1d   : > { %p573_p0 = pneg %p572_p13  ;;  %p578_p2 = scmp.lt.s32.totalorder %s576_s4, %s570_s28 }
  0x1f   : > { %p579_p3 = por %p578_p2, %p577_p1 }
  0x21   : > { %p580_p5 = pnand %p579_p3, %p573_p0 }
  0xee   : > { %v248_v5 = vpop.f32.mrb[0].mxu0 }
  0xef   : > { %v258_v6 = vpack.c.bf16 %v248_v5, %v248_v5  ;;  %v484_v7 = vpop.f32.mrb[1].mxu0 }
  0xf0   : > { %v251_v8 = vpop.f32.mrb[2].mxu0 }
  0xf1   : > { %v485_v9 = vpop.f32.mrb[3].mxu0  ;;  %492 = vmatprep.subr.msk.bf16.mxu1 %vm210_vm0, %v258_v6  ;;  %v276_v10 = vsel %vm210_vm0, %v258_v6, 0 }
  0xf2   : > { %487 = vmatpush3.bf16.msra.mxu1 %v276_v10 }
  0xf5   : > { %489 = vmatmul.mubr.msk.bf16.vlgmr.msra.gmra.mrb[0].mxu1 %vm206_vm2, %v553_v11 }
 0x1c8   : > { %v490_v12 = vpop.f32.mrb[0].mxu1 }
 0x1c9   : > { %v329_v13 = vsub.f32 0.0, %v490_v12  ;;  %v312_v14 = vpop.f32.mrb[1].mxu1 }
 0x1ca   : > { %v327_v15 = vsub.f32 0.0, %v312_v14  ;;  %v491_v16 = vpop.f32.mrb[2].mxu1 }
 0x1cb   : > { %v335_v17 = vmul.f32 1.442695, %v329_v13  ;;  %v330_v18 = vsub.f32 0.0, %v491_v16  ;;  %v315_v19 = vpop.f32.mrb[3].mxu1 }
 0x1cc   : > { %v331_v20 = vmul.f32 1.442695, %v327_v15  ;;  %v328_v21 = vsub.f32 0.0, %v315_v19 }
 0x1cd   : > { %554 = vpow2.f32 %v335_v17  ;;  %v337_v22 = vmul.f32 1.442695, %v330_v18 }
 0x1ce   : > { %556 = vpow2.f32 %v331_v20  ;;  %v333_v23 = vmul.f32 1.442695, %v328_v21 }
 0x1cf   : > { %558 = vpow2.f32 %v337_v22 }
 0x1d0   : > { %560 = vpow2.f32 %v333_v23 }
 0x1d7   : > { %v555_v24 = vpop.eup %554 }
 0x1d8   : > { %v557_v25 = vpop.eup %556  ;;  %v341_v26 = vadd.f32 1.0, %v555_v24 }
 0x1d9   : > { %v559_v27 = vpop.eup %558  ;;  %v339_v28 = vadd.f32 1.0, %v557_v25 }
 0x1da   : > { %v561_v29 = vpop.eup %560  ;;  %562 = vrcp.f32 %v341_v26  ;;  %v342_v30 = vadd.f32 1.0, %v559_v27 }
 0x1db   : > { %564 = vrcp.f32 %v339_v28  ;;  %v340_v31 = vadd.f32 1.0, %v561_v29 }
 0x1dc   : > { %566 = vrcp.f32 %v342_v30 }
 0x1dd   : > { %568 = vrcp.f32 %v340_v31 }
 0x1e4   : > { %v563_v32 = vpop.eup %562 }
 0x1e5   : > { %v565_v33 = vpop.eup %564  ;;  %350 = vst.msk [vmem:[%s191_s19 + $0x10] sm:$0xff] %vm347_vm3, %v563_v32 }
 0x1e6   : > { %v567_v34 = vpop.eup %566  ;;  %348 = vst.msk [vmem:[%s191_s19] sm:$0xff] %vm347_vm3, %v565_v33 }
 0x1e7   : > { %v569_v35 = vpop.eup %568  ;;  %351 = vst.msk [vmem:[%s191_s19 + $0x18] sm:$0xff] %vm347_vm3, %v567_v34 }
 0x1e8   : > { %349 = vst.msk [vmem:[%s191_s19 + $0x8] sm:$0xff] %vm347_vm3, %v569_v35 }
 0x1e9   : > { %583 = shalt.err (!%p580_p5)
}
 0x1ea   : > { %s584_s5 = scalar_lea.hbm %s752_s27, 512  ;;  %s588_s8 = scalar_lea.hbm %s805_s3, 1024 }
 0x1eb   : > { %p585_p6 = scmp.ne.s32.totalorder %s752_s27, %s584_s5  ;;  %p589_p10 = scmp.lt.u32.totalorder %s752_s27, %s805_s3 }
 0x1ec   : > { %p590_p11 = scmp.lt.u32.totalorder %s588_s8, %s584_s5  ;;  %p592_p13 = scmp.lt.u32.totalorder %s584_s5, %s752_s27 }
 0x1ed   : > { %p586_p7 = pnand %p585_p6, %p715_p4 }
 0x1ee   : > { %p591_p12 = por %p590_p11, %p589_p10 }
 0x1ef   : > { %p587_p9 = pneg %p586_p7 }
 0x1f0   : > { %p593_p0 = por %p592_p13, %p591_p12 }
 0x1f2   : > { %p594_p1 = pnand %p593_p0, %p587_p9 }
 0x1f4   : > { %597 = shalt.err (!%p594_p1)
}
 0x1f5   : > { %s653_s11 = smov 128   ;;  %s654_s18 = smov 8  }
 0x1f6   : > { %493 = dma.vmem_to_hbm [thread:$0]  (%p715_p4), %s754_s21, 512, %s752_s27, %s756_s15, %s653_s11, %s653_s11, %s654_s18  }
 0x1f7 PF: > { %p499_p2 = scmp.ge.s32.totalorder %s648_s17, 2  ;;  %s383_s19 = sand.u32 1, %s628_s12  }
 0x1f8   : > { %s384_s23 = scalar_lea.sflag [#allocation3], %s383_s19 }
 0x1f9   : > { %p496_p3 = pnand %p499_p2, %p722_p8 }
 0x1fb   : > { %623 = dma.done.wait (!%p496_p3), %s384_s23, 512  }
 0x1fc   : > { %625 = vsyncadd (!%p496_p3), %s384_s23, 4294966784  ;;  %s16_s17 = sadd.s32 1, %s648_s17   ;;  %s808_s12 = smov %s632_s13 }
 0x1fd   : > { %p13_p5 = scmp.ge.s32.totalorder %s16_s17, 4   ;;  %s809_s13 = smov %s636_s14 }
 0x1fe   : > { %s810_s14 = smov %s728_s25  ;;  %s811_s15 = smov %s644_s16 }
 0x1ff   : > { %s812_s16 = smov %s814_s20  ;;  %15 = sbr.rel (!%p13_p5) target bundleno = 4 (0x4), region = 70 }
 0x206   :  { %389 = vsyncpa [#allocation3], 1 }
 0x207   :  { %391 = vsyncpa [#allocation3 + $0x1], 1 }

</bundles_post_ra>
